<compile_context>
chip_gen: v7x
topology: tpu7x:2x2x1
jax: 0.10.0
libtpu: 0.0.40
codegen_flags: <defaults>
</compile_context>

<pallas_src>
import functools

import numpy as np
import jax
import jax.numpy as jnp
from jax.experimental import pallas as pl
from jax.experimental.pallas import tpu as pltpu

# ---------------- FLIP constants (from SteppedLDRFLIPLoss.__init__) ----------
QC = 0.7
QF = 0.5
PC = 0.4
PT = 0.95
EPS = 1e-15


def _compute_cmax(qc=QC, eps=EPS):
    """cmax = hyab(hunt(lab(green)), hunt(lab(blue)))**qc  (scalar init constant)."""
    def linrgb2lab(c):
        a_mat = np.array(
            [[10135552 / 24577794, 8788810 / 24577794, 4435075 / 24577794],
             [2613072 / 12288897, 8788810 / 12288897, 887015 / 12288897],
             [1425312 / 73733382, 8788810 / 73733382, 70074185 / 73733382]],
            dtype=np.float64)
        xyz = a_mat @ c
        inv_ref_illuminant = np.array([1.052156925, 1.0, 0.918357670])
        xyz = xyz * inv_ref_illuminant
        delta = 6.0 / 29.0
        delta_cube = delta ** 3
        factor = 1.0 / (3.0 * delta * delta)
        f = np.where(xyz > delta_cube,
                     np.cbrt(np.maximum(xyz, delta_cube)),
                     factor * xyz + 4.0 / 29.0)
        L = 116.0 * f[1] - 16.0
        a = 500.0 * (f[0] - f[1])
        b = 200.0 * (f[1] - f[2])
        return np.array([L, a, b])

    def hunt(lab):
        L, a, b = lab
        return np.array([L, 0.01 * L * a, 0.01 * L * b])

    g = hunt(linrgb2lab(np.array([0.0, 1.0, 0.0])))
    b = hunt(linrgb2lab(np.array([0.0, 0.0, 1.0])))
    d = g - b
    hyab = np.sqrt(d[0] * d[0] + eps) + np.sqrt(d[1] * d[1] + d[2] * d[2])
    return float(hyab ** qc)


CMAX = _compute_cmax()


# ------------------------------- Pallas kernel --------------------------------
def _flip_kernel(pre_r_ref, pre_t_ref, edg_r_ref, edg_t_ref, pts_r_ref, pts_t_ref,
                 out_ref, *, rows, chunk, unroll, gj, hw, cmax, need_mask):
    # Refs:
    #   pre_*: (3, rows, 128)   edg_*/pts_*: (2, rows, 128)   out: (8, 128)
    j = pl.program_id(1)

    # Trace-time scalar constants (no per-element division on the EUP).
    pccmax = PC * cmax
    scale_lo = PT / pccmax
    inv_span = (1.0 - PT) / (cmax - pccmax)
    inv_sqrt2 = float(1.0 / np.sqrt(2.0))

    n_chunks = rows // chunk

    def chunk_err(s):
        """Full per-pixel FLIP chain on a (chunk, 128) slice (~10-16 live vregs)."""
        sl = pl.ds(s, chunk)

        # --- color pipeline: HyAB distance on hunt-adjusted Lab ---
        dL = pre_r_ref[0, sl, :] - pre_t_ref[0, sl, :]
        dA = pre_r_ref[1, sl, :] - pre_t_ref[1, sl, :]
        dB = pre_r_ref[2, sl, :] - pre_t_ref[2, sl, :]
        # Keep sqrt(dL*dL + EPS) (exact FLIP semantics); abs(dL) would save one
        # EUP op but shifts results ~3e-8 and kinks the gradient at 0.
        delta_hyab = jnp.sqrt(dL * dL + EPS) + jnp.sqrt(dA * dA + dB * dB)
        power_hyab = delta_hyab ** QC

        # redistribute_errors (upper branch strength-reduced: mul by inv_span)
        deltaE_c = jnp.where(power_hyab < pccmax,
                             scale_lo * power_hyab,
                             PT + (power_hyab - pccmax) * inv_span)

        # --- feature pipeline: channel norms of edge/point responses ---
        erx = edg_r_ref[0, sl, :]; ery = edg_r_ref[1, sl, :]
        etx = edg_t_ref[0, sl, :]; ety = edg_t_ref[1, sl, :]
        prx = pts_r_ref[0, sl, :]; pry = pts_r_ref[1, sl, :]
        ptx = pts_t_ref[0, sl, :]; pty = pts_t_ref[1, sl, :]
        norm_er = jnp.sqrt(erx * erx + ery * ery)
        norm_et = jnp.sqrt(etx * etx + ety * ety)
        norm_pr = jnp.sqrt(prx * prx + pry * pry)
        norm_pt = jnp.sqrt(ptx * ptx + pty * pty)

        deltaE_f = jnp.maximum(jnp.abs(norm_er - norm_et),
                               jnp.abs(norm_pt - norm_pr))
        deltaE_f = jnp.maximum(deltaE_f, EPS)
        # qf == 0.5  ->  single EUP sqrt instead of exp(0.5*log(x))
        deltaE_f = jnp.sqrt(inv_sqrt2 * deltaE_f)

        return deltaE_c ** (1.0 - deltaE_f)                # (chunk, 128)

    def fold8(x):
        # (chunk, 128) -> (8, 128), VPU adds only (static, tiny unrolled chain).
        acc = x[0:8, :]
        for g in range(1, chunk // 8):
            acc = acc + x[g * 8:(g + 1) * 8, :]
        return acc

    def run(masked):
        if masked:
            # Loop-invariant iotas hoisted out of the fori_loop body.
            lane = jax.lax.broadcasted_iota(jnp.int32, (chunk, 128), 1)
            row = jax.lax.broadcasted_iota(jnp.int32, (chunk, 128), 0)
            base = (j * rows + row) * 128 + lane           # pixel idx at chunk 0

        def body(i, acc):
            s = pl.multiple_of(i * chunk, 8)
            e = chunk_err(s)
            if masked:
                # Select (never multiply): OOB / padded pixels may be NaN/Inf.
                e = jnp.where(base + s * 128 < hw, e, 0.0)
            return acc + fold8(e)

        out_ref[...] = jax.lax.fori_loop(
            0, n_chunks, body, jnp.zeros((8, 128), jnp.float32), unroll=unroll)

    if need_mask:
        # Padding / partial-tile garbage only exists on the last row-tile.
        last = gj - 1

        @pl.when(j == last)
        def _():
            run(True)

        @pl.when(j != last)
        def _():
            run(False)
    else:
        run(False)


# --------------------------------- wrapper -------------------------------------
# 512 rows x 128 lanes = 65536 pixels per grid step (~7 MiB double-buffered
# inputs) — safe within scoped VMEM on v5e / v6e / v7x.  On v6e this can be
# raised to 1024 (with a larger vmem_limit_bytes); keep <= 1024 on v7x (64 MiB
# physical VMEM).
_BLOCK_ROWS = 512
_VMEM_LIMIT = 32 * 1024 * 1024


def _prep(x, hw_pad):
    """(N, C, H, W) -> (N, C, hw_pad/128, 128); pads HW only when necessary."""
    n, c, h, w = x.shape
    hw = h * w
    x = x.reshape(n, c, hw).astype(jnp.float32)
    if hw_pad != hw:
        x = jnp.pad(x, ((0, 0), (0, 0), (0, hw_pad - hw)))
    return x.reshape(n, c, hw_pad // 128, 128)


def stepped_ldr_flip_loss(test, reference, *, block_rows=_BLOCK_ROWS):
    pre_t, edg_t, pts_t = test
    pre_r, edg_r, pts_r = reference

    n, _, h, w = pre_t.shape
    hw = h * w
    hw_pad = ((hw + 1023) // 1024) * 1024      # rows dim a multiple of 8
    r_dim = hw_pad // 128
    rows = min(block_rows, r_dim)              # both multiples of 8
    gj = pl.cdiv(r_dim, rows)
    need_mask = (gj * rows * 128 != hw)

    # vreg-chunked inner-loop parameters (review item 1).
    chunk = 16 if rows % 16 == 0 else 8
    n_chunks = rows // chunk
    unroll = max(1, min(4, n_chunks))

    ins = [_prep(a, hw_pad) for a in (pre_r, pre_t, edg_r, edg_t, pts_r, pts_t)]

    kernel = functools.partial(_flip_kernel, rows=rows, chunk=chunk, unroll=unroll,
                               gj=gj, hw=hw, cmax=CMAX, need_mask=need_mask)

    def in_spec(c):
        return pl.BlockSpec((None, c, rows, 128), lambda i, j: (i, 0, j, 0))

    partials = pl.pallas_call(
        kernel,
        out_shape=jax.ShapeDtypeStruct((n * gj, 8, 128), jnp.float32),
        grid=(n, gj),
        in_specs=[in_spec(3), in_spec(3),
                  in_spec(2), in_spec(2), in_spec(2), in_spec(2)],
        out_specs=pl.BlockSpec((None, 8, 128), lambda i, j: (i * gj + j, 0, 0)),
        compiler_params=pltpu.CompilerParams(
            dimension_semantics=("parallel", "parallel"),
            vmem_limit_bytes=_VMEM_LIMIT),
    )(*ins)

    return jnp.sum(partials) / jnp.float32(n * hw)


# ---------------------------- pure-JAX reference --------------------------------
def _ldr_flip_loss_ref(test, reference):
    pre_t, edg_t, pts_t = [x.astype(jnp.float32) for x in test]
    pre_r, edg_r, pts_r = [x.astype(jnp.float32) for x in reference]
    d = pre_r - pre_t
    delta_hyab = jnp.sqrt(d[:, 0:1] ** 2 + EPS) + jnp.sqrt(d[:, 1:2] ** 2 + d[:, 2:3] ** 2)
    power_hyab = delta_hyab ** QC
    pccmax = PC * CMAX
    deltaE_c = jnp.where(power_hyab < pccmax,
                         (PT / pccmax) * power_hyab,
                         PT + ((power_hyab - pccmax) / (CMAX - pccmax)) * (1.0 - PT))
    norm = lambda x: jnp.sqrt(jnp.sum(x * x, axis=1, keepdims=True))
    deltaE_f = jnp.maximum(jnp.abs(norm(edg_r) - norm(edg_t)),
                           jnp.abs(norm(pts_t) - norm(pts_r)))
    deltaE_f = jnp.maximum(deltaE_f, EPS)
    deltaE_f = ((1.0 / np.sqrt(2.0)) * deltaE_f) ** QF
    return jnp.mean(deltaE_c ** (1.0 - deltaE_f))


# ------------------------------------ main ---------------------------------------
if __name__ == "__main__":
    # NOTE: preprocess_ldrflip (PIL decode + spatial/feature conv filtering) runs on
    # host images in the original module; here we feed its outputs directly.
    # TODO(synk): spatial_filter / feature_detection convolutions are outside the
    # kernelized forward() hot path and are not re-implemented here.
    N, H, W = 2, 16, 16
    key = jax.random.PRNGKey(0)
    k = jax.random.split(key, 6)

    # preprocessed: hunt-adjusted Lab-ish values; edges/points: small responses
    pre_test = jax.random.uniform(k[0], (N, 3, H, W), jnp.float32, 0.0, 50.0)
    pre_ref = jax.random.uniform(k[1], (N, 3, H, W), jnp.float32, 0.0, 50.0)
    edg_test = jax.random.uniform(k[2], (N, 2, H, W), jnp.float32, 0.0, 0.2)
    edg_ref = jax.random.uniform(k[3], (N, 2, H, W), jnp.float32, 0.0, 0.2)
    pts_test = jax.random.uniform(k[4], (N, 2, H, W), jnp.float32, 0.0, 0.2)
    pts_ref = jax.random.uniform(k[5], (N, 2, H, W), jnp.float32, 0.0, 0.2)

    test = (pre_test, edg_test, pts_test)
    reference = (pre_ref, edg_ref, pts_ref)

    out = stepped_ldr_flip_loss(test, reference)
    out = jax.block_until_ready(out)

    ref_out = jax.block_until_ready(_ldr_flip_loss_ref(test, reference))
    np.testing.assert_allclose(np.asarray(out), np.asarray(ref_out),
                               rtol=1e-4, atol=1e-6)
    print("KERNEL_OK")
</pallas_src>

<mosaic_0001>
module attributes {stable_mosaic.version = 11 : i64} {
  func.func @_flip_kernel(%arg0: i32, %arg1: i32, %arg2: memref<1x3x8x128xf32, #tpu.memory_space<vmem>>, %arg3: memref<1x3x8x128xf32, #tpu.memory_space<vmem>>, %arg4: memref<1x2x8x128xf32, #tpu.memory_space<vmem>>, %arg5: memref<1x2x8x128xf32, #tpu.memory_space<vmem>>, %arg6: memref<1x2x8x128xf32, #tpu.memory_space<vmem>>, %arg7: memref<1x2x8x128xf32, #tpu.memory_space<vmem>>, %arg8: memref<1x8x128xf32, #tpu.memory_space<vmem>>) attributes {dimension_semantics = [#tpu.dimension_semantics<parallel>, #tpu.dimension_semantics<parallel>], iteration_bounds = array<i64: 2, 1>, scalar_prefetch = 0 : i64, scratch_operands = 0 : i64, tpu.core_type = #tpu.core_type<tc>, window_params = [{transform_indices = @transform_0, window_bounds = array<i64: 1, 3, 8, 128>}, {transform_indices = @transform_1, window_bounds = array<i64: 1, 3, 8, 128>}, {transform_indices = @transform_2, window_bounds = array<i64: 1, 2, 8, 128>}, {transform_indices = @transform_3, window_bounds = array<i64: 1, 2, 8, 128>}, {transform_indices = @transform_4, window_bounds = array<i64: 1, 2, 8, 128>}, {transform_indices = @transform_5, window_bounds = array<i64: 1, 2, 8, 128>}, {transform_indices = @transform_6, window_bounds = array<i64: 1, 8, 128>}]} {
    %c0_i32 = arith.constant 0 : i32
    %0 = arith.cmpi eq, %arg1, %c0_i32 : i32
    %1 = arith.extui %0 : i1 to i32
    %c0_i32_0 = arith.constant 0 : i32
    %2 = arith.cmpi ne, %1, %c0_i32_0 : i32
    scf.if %2 {
      %6 = tpu.iota {dimensions = array<i32: 1>} : vector<8x128xi32>
      %7 = tpu.iota {dimensions = array<i32: 0>} : vector<8x128xi32>
      %c8_i32 = arith.constant 8 : i32
      %8 = arith.muli %arg1, %c8_i32 : i32
      %9 = vector.broadcast %8 : i32 to vector<8x128xi32>
      %10 = arith.addi %9, %7 : vector<8x128xi32>
      %c128_i32 = arith.constant 128 : i32
      %11 = vector.broadcast %c128_i32 : i32 to vector<8x128xi32>
      %12 = arith.muli %10, %11 : vector<8x128xi32>
      %13 = arith.addi %12, %6 : vector<8x128xi32>
      %cst = arith.constant 0.000000e+00 : f32
      %14 = vector.broadcast %cst : f32 to vector<8x128xf32>
      %c0_i32_3 = arith.constant 0 : i32
      %c8_i32_4 = arith.constant 8 : i32
      %15 = arith.muli %c0_i32_3, %c8_i32_4 : i32
      %16 = tpu.assume_multiple %15, 8 : i32
      %c0 = arith.constant 0 : index
      %c0_5 = arith.constant 0 : index
      %17 = arith.index_cast %16 : i32 to index
      %c0_6 = arith.constant 0 : index
      %18 = vector.load %arg2[%c0, %c0_5, %17, %c0_6] : memref<1x3x8x128xf32, #tpu.memory_space<vmem>>, vector<1x1x8x128xf32>
      %19 = vector.shape_cast %18 : vector<1x1x8x128xf32> to vector<8x128xf32>
      %c0_7 = arith.constant 0 : index
      %c0_8 = arith.constant 0 : index
      %20 = arith.index_cast %16 : i32 to index
      %c0_9 = arith.constant 0 : index
      %21 = vector.load %arg3[%c0_7, %c0_8, %20, %c0_9] : memref<1x3x8x128xf32, #tpu.memory_space<vmem>>, vector<1x1x8x128xf32>
      %22 = vector.shape_cast %21 : vector<1x1x8x128xf32> to vector<8x128xf32>
      %23 = arith.subf %19, %22 : vector<8x128xf32>
      %c0_10 = arith.constant 0 : index
      %c1 = arith.constant 1 : index
      %24 = arith.index_cast %16 : i32 to index
      %c0_11 = arith.constant 0 : index
      %25 = vector.load %arg2[%c0_10, %c1, %24, %c0_11] : memref<1x3x8x128xf32, #tpu.memory_space<vmem>>, vector<1x1x8x128xf32>
      %26 = vector.shape_cast %25 : vector<1x1x8x128xf32> to vector<8x128xf32>
      %c0_12 = arith.constant 0 : index
      %c1_13 = arith.constant 1 : index
      %27 = arith.index_cast %16 : i32 to index
      %c0_14 = arith.constant 0 : index
      %28 = vector.load %arg3[%c0_12, %c1_13, %27, %c0_14] : memref<1x3x8x128xf32, #tpu.memory_space<vmem>>, vector<1x1x8x128xf32>
      %29 = vector.shape_cast %28 : vector<1x1x8x128xf32> to vector<8x128xf32>
      %30 = arith.subf %26, %29 : vector<8x128xf32>
      %c0_15 = arith.constant 0 : index
      %c2 = arith.constant 2 : index
      %31 = arith.index_cast %16 : i32 to index
      %c0_16 = arith.constant 0 : index
      %32 = vector.load %arg2[%c0_15, %c2, %31, %c0_16] : memref<1x3x8x128xf32, #tpu.memory_space<vmem>>, vector<1x1x8x128xf32>
      %33 = vector.shape_cast %32 : vector<1x1x8x128xf32> to vector<8x128xf32>
      %c0_17 = arith.constant 0 : index
      %c2_18 = arith.constant 2 : index
      %34 = arith.index_cast %16 : i32 to index
      %c0_19 = arith.constant 0 : index
      %35 = vector.load %arg3[%c0_17, %c2_18, %34, %c0_19] : memref<1x3x8x128xf32, #tpu.memory_space<vmem>>, vector<1x1x8x128xf32>
      %36 = vector.shape_cast %35 : vector<1x1x8x128xf32> to vector<8x128xf32>
      %37 = arith.subf %33, %36 : vector<8x128xf32>
      %38 = arith.mulf %23, %23 : vector<8x128xf32>
      %cst_20 = arith.constant 1.000000e-15 : f32
      %39 = vector.broadcast %cst_20 : f32 to vector<8x128xf32>
      %40 = arith.addf %38, %39 : vector<8x128xf32>
      %41 = math.sqrt %40 : vector<8x128xf32>
      %42 = arith.mulf %30, %30 : vector<8x128xf32>
      %43 = arith.mulf %37, %37 : vector<8x128xf32>
      %44 = arith.addf %42, %43 : vector<8x128xf32>
      %45 = math.sqrt %44 : vector<8x128xf32>
      %46 = arith.addf %41, %45 : vector<8x128xf32>
      %cst_21 = arith.constant 0.699999988 : f32
      %47 = vector.broadcast %cst_21 : f32 to vector<8x128xf32>
      %48 = math.powf %46, %47 : vector<8x128xf32>
      %cst_22 = arith.constant 16.5104389 : f32
      %49 = vector.broadcast %cst_22 : f32 to vector<8x128xf32>
      %50 = arith.cmpf olt, %48, %49 : vector<8x128xf32>
      %cst_23 = arith.constant 0.0575393513 : f32
      %51 = vector.broadcast %cst_23 : f32 to vector<8x128xf32>
      %52 = arith.mulf %51, %48 : vector<8x128xf32>
      %cst_24 = arith.constant 16.5104389 : f32
      %53 = vector.broadcast %cst_24 : f32 to vector<8x128xf32>
      %54 = arith.subf %48, %53 : vector<8x128xf32>
      %cst_25 = arith.constant 0.00201892457 : f32
      %55 = vector.broadcast %cst_25 : f32 to vector<8x128xf32>
      %56 = arith.mulf %54, %55 : vector<8x128xf32>
      %cst_26 = arith.constant 0.949999988 : f32
      %57 = vector.broadcast %cst_26 : f32 to vector<8x128xf32>
      %58 = arith.addf %57, %56 : vector<8x128xf32>
      %59 = arith.select %50, %52, %58 : vector<8x128xi1>, vector<8x128xf32>
      %c0_27 = arith.constant 0 : index
      %c0_28 = arith.constant 0 : index
      %60 = arith.index_cast %16 : i32 to index
      %c0_29 = arith.constant 0 : index
      %61 = vector.load %arg4[%c0_27, %c0_28, %60, %c0_29] : memref<1x2x8x128xf32, #tpu.memory_space<vmem>>, vector<1x1x8x128xf32>
      %62 = vector.shape_cast %61 : vector<1x1x8x128xf32> to vector<8x128xf32>
      %c0_30 = arith.constant 0 : index
      %c1_31 = arith.constant 1 : index
      %63 = arith.index_cast %16 : i32 to index
      %c0_32 = arith.constant 0 : index
      %64 = vector.load %arg4[%c0_30, %c1_31, %63, %c0_32] : memref<1x2x8x128xf32, #tpu.memory_space<vmem>>, vector<1x1x8x128xf32>
      %65 = vector.shape_cast %64 : vector<1x1x8x128xf32> to vector<8x128xf32>
      %c0_33 = arith.constant 0 : index
      %c0_34 = arith.constant 0 : index
      %66 = arith.index_cast %16 : i32 to index
      %c0_35 = arith.constant 0 : index
      %67 = vector.load %arg5[%c0_33, %c0_34, %66, %c0_35] : memref<1x2x8x128xf32, #tpu.memory_space<vmem>>, vector<1x1x8x128xf32>
      %68 = vector.shape_cast %67 : vector<1x1x8x128xf32> to vector<8x128xf32>
      %c0_36 = arith.constant 0 : index
      %c1_37 = arith.constant 1 : index
      %69 = arith.index_cast %16 : i32 to index
      %c0_38 = arith.constant 0 : index
      %70 = vector.load %arg5[%c0_36, %c1_37, %69, %c0_38] : memref<1x2x8x128xf32, #tpu.memory_space<vmem>>, vector<1x1x8x128xf32>
      %71 = vector.shape_cast %70 : vector<1x1x8x128xf32> to vector<8x128xf32>
      %c0_39 = arith.constant 0 : index
      %c0_40 = arith.constant 0 : index
      %72 = arith.index_cast %16 : i32 to index
      %c0_41 = arith.constant 0 : index
      %73 = vector.load %arg6[%c0_39, %c0_40, %72, %c0_41] : memref<1x2x8x128xf32, #tpu.memory_space<vmem>>, vector<1x1x8x128xf32>
      %74 = vector.shape_cast %73 : vector<1x1x8x128xf32> to vector<8x128xf32>
      %c0_42 = arith.constant 0 : index
      %c1_43 = arith.constant 1 : index
      %75 = arith.index_cast %16 : i32 to index
      %c0_44 = arith.constant 0 : index
      %76 = vector.load %arg6[%c0_42, %c1_43, %75, %c0_44] : memref<1x2x8x128xf32, #tpu.memory_space<vmem>>, vector<1x1x8x128xf32>
      %77 = vector.shape_cast %76 : vector<1x1x8x128xf32> to vector<8x128xf32>
      %c0_45 = arith.constant 0 : index
      %c0_46 = arith.constant 0 : index
      %78 = arith.index_cast %16 : i32 to index
      %c0_47 = arith.constant 0 : index
      %79 = vector.load %arg7[%c0_45, %c0_46, %78, %c0_47] : memref<1x2x8x128xf32, #tpu.memory_space<vmem>>, vector<1x1x8x128xf32>
      %80 = vector.shape_cast %79 : vector<1x1x8x128xf32> to vector<8x128xf32>
      %c0_48 = arith.constant 0 : index
      %c1_49 = arith.constant 1 : index
      %81 = arith.index_cast %16 : i32 to index
      %c0_50 = arith.constant 0 : index
      %82 = vector.load %arg7[%c0_48, %c1_49, %81, %c0_50] : memref<1x2x8x128xf32, #tpu.memory_space<vmem>>, vector<1x1x8x128xf32>
      %83 = vector.shape_cast %82 : vector<1x1x8x128xf32> to vector<8x128xf32>
      %84 = arith.mulf %62, %62 : vector<8x128xf32>
      %85 = arith.mulf %65, %65 : vector<8x128xf32>
      %86 = arith.addf %84, %85 : vector<8x128xf32>
      %87 = math.sqrt %86 : vector<8x128xf32>
      %88 = arith.mulf %68, %68 : vector<8x128xf32>
      %89 = arith.mulf %71, %71 : vector<8x128xf32>
      %90 = arith.addf %88, %89 : vector<8x128xf32>
      %91 = math.sqrt %90 : vector<8x128xf32>
      %92 = arith.mulf %74, %74 : vector<8x128xf32>
      %93 = arith.mulf %77, %77 : vector<8x128xf32>
      %94 = arith.addf %92, %93 : vector<8x128xf32>
      %95 = math.sqrt %94 : vector<8x128xf32>
      %96 = arith.mulf %80, %80 : vector<8x128xf32>
      %97 = arith.mulf %83, %83 : vector<8x128xf32>
      %98 = arith.addf %96, %97 : vector<8x128xf32>
      %99 = math.sqrt %98 : vector<8x128xf32>
      %100 = arith.subf %87, %91 : vector<8x128xf32>
      %101 = math.absf %100 : vector<8x128xf32>
      %102 = arith.subf %99, %95 : vector<8x128xf32>
      %103 = math.absf %102 : vector<8x128xf32>
      %104 = arith.maximumf %101, %103 : vector<8x128xf32>
      %cst_51 = arith.constant 1.000000e-15 : f32
      %105 = vector.broadcast %cst_51 : f32 to vector<8x128xf32>
      %106 = arith.maximumf %104, %105 : vector<8x128xf32>
      %cst_52 = arith.constant 0.707106769 : f32
      %107 = vector.broadcast %cst_52 : f32 to vector<8x128xf32>
      %108 = arith.mulf %107, %106 : vector<8x128xf32>
      %109 = math.sqrt %108 : vector<8x128xf32>
      %cst_53 = arith.constant 1.000000e+00 : f32
      %110 = vector.broadcast %cst_53 : f32 to vector<8x128xf32>
      %111 = arith.subf %110, %109 : vector<8x128xf32>
      %112 = math.powf %59, %111 : vector<8x128xf32>
      %c128_i32_54 = arith.constant 128 : i32
      %113 = arith.muli %16, %c128_i32_54 : i32
      %114 = vector.broadcast %113 : i32 to vector<8x128xi32>
      %115 = arith.addi %13, %114 : vector<8x128xi32>
      %c256_i32 = arith.constant 256 : i32
      %116 = vector.broadcast %c256_i32 : i32 to vector<8x128xi32>
      %117 = arith.cmpi slt, %115, %116 : vector<8x128xi32>
      %cst_55 = arith.constant 0.000000e+00 : f32
      %118 = vector.broadcast %cst_55 : f32 to vector<8x128xf32>
      %119 = arith.select %117, %112, %118 : vector<8x128xi1>, vector<8x128xf32>
      %120 = arith.addf %14, %119 : vector<8x128xf32>
      %c1_i32 = arith.constant 1 : i32
      %c0_56 = arith.constant 0 : index
      %c0_57 = arith.constant 0 : index
      %c0_58 = arith.constant 0 : index
      %121 = vector.load %arg8[%c0_56, %c0_57, %c0_58] : memref<1x8x128xf32, #tpu.memory_space<vmem>>, vector<1x8x128xf32>
      %122 = vector.shape_cast %121 : vector<1x8x128xf32> to vector<8x128xf32>
      %123 = vector.shape_cast %120 : vector<8x128xf32> to vector<1x8x128xf32>
      tpu.vector_store %arg8[%c0_56, %c0_57, %c0_58], %123 {strides = array<i32>} : memref<1x8x128xf32, #tpu.memory_space<vmem>>, vector<1x8x128xf32>,
    } else {
    }
    %c0_i32_1 = arith.constant 0 : i32
    %3 = arith.cmpi ne, %arg1, %c0_i32_1 : i32
    %4 = arith.extui %3 : i1 to i32
    %c0_i32_2 = arith.constant 0 : i32
    %5 = arith.cmpi ne, %4, %c0_i32_2 : i32
    scf.if %5 {
      %cst = arith.constant 0.000000e+00 : f32
      %6 = vector.broadcast %cst : f32 to vector<8x128xf32>
      %c0_i32_3 = arith.constant 0 : i32
      %c8_i32 = arith.constant 8 : i32
      %7 = arith.muli %c0_i32_3, %c8_i32 : i32
      %8 = tpu.assume_multiple %7, 8 : i32
      %c0 = arith.constant 0 : index
      %c0_4 = arith.constant 0 : index
      %9 = arith.index_cast %8 : i32 to index
      %c0_5 = arith.constant 0 : index
      %10 = vector.load %arg2[%c0, %c0_4, %9, %c0_5] : memref<1x3x8x128xf32, #tpu.memory_space<vmem>>, vector<1x1x8x128xf32>
      %11 = vector.shape_cast %10 : vector<1x1x8x128xf32> to vector<8x128xf32>
      %c0_6 = arith.constant 0 : index
      %c0_7 = arith.constant 0 : index
      %12 = arith.index_cast %8 : i32 to index
      %c0_8 = arith.constant 0 : index
      %13 = vector.load %arg3[%c0_6, %c0_7, %12, %c0_8] : memref<1x3x8x128xf32, #tpu.memory_space<vmem>>, vector<1x1x8x128xf32>
      %14 = vector.shape_cast %13 : vector<1x1x8x128xf32> to vector<8x128xf32>
      %15 = arith.subf %11, %14 : vector<8x128xf32>
      %c0_9 = arith.constant 0 : index
      %c1 = arith.constant 1 : index
      %16 = arith.index_cast %8 : i32 to index
      %c0_10 = arith.constant 0 : index
      %17 = vector.load %arg2[%c0_9, %c1, %16, %c0_10] : memref<1x3x8x128xf32, #tpu.memory_space<vmem>>, vector<1x1x8x128xf32>
      %18 = vector.shape_cast %17 : vector<1x1x8x128xf32> to vector<8x128xf32>
      %c0_11 = arith.constant 0 : index
      %c1_12 = arith.constant 1 : index
      %19 = arith.index_cast %8 : i32 to index
      %c0_13 = arith.constant 0 : index
      %20 = vector.load %arg3[%c0_11, %c1_12, %19, %c0_13] : memref<1x3x8x128xf32, #tpu.memory_space<vmem>>, vector<1x1x8x128xf32>
      %21 = vector.shape_cast %20 : vector<1x1x8x128xf32> to vector<8x128xf32>
      %22 = arith.subf %18, %21 : vector<8x128xf32>
      %c0_14 = arith.constant 0 : index
      %c2 = arith.constant 2 : index
      %23 = arith.index_cast %8 : i32 to index
      %c0_15 = arith.constant 0 : index
      %24 = vector.load %arg2[%c0_14, %c2, %23, %c0_15] : memref<1x3x8x128xf32, #tpu.memory_space<vmem>>, vector<1x1x8x128xf32>
      %25 = vector.shape_cast %24 : vector<1x1x8x128xf32> to vector<8x128xf32>
      %c0_16 = arith.constant 0 : index
      %c2_17 = arith.constant 2 : index
      %26 = arith.index_cast %8 : i32 to index
      %c0_18 = arith.constant 0 : index
      %27 = vector.load %arg3[%c0_16, %c2_17, %26, %c0_18] : memref<1x3x8x128xf32, #tpu.memory_space<vmem>>, vector<1x1x8x128xf32>
      %28 = vector.shape_cast %27 : vector<1x1x8x128xf32> to vector<8x128xf32>
      %29 = arith.subf %25, %28 : vector<8x128xf32>
      %30 = arith.mulf %15, %15 : vector<8x128xf32>
      %cst_19 = arith.constant 1.000000e-15 : f32
      %31 = vector.broadcast %cst_19 : f32 to vector<8x128xf32>
      %32 = arith.addf %30, %31 : vector<8x128xf32>
      %33 = math.sqrt %32 : vector<8x128xf32>
      %34 = arith.mulf %22, %22 : vector<8x128xf32>
      %35 = arith.mulf %29, %29 : vector<8x128xf32>
      %36 = arith.addf %34, %35 : vector<8x128xf32>
      %37 = math.sqrt %36 : vector<8x128xf32>
      %38 = arith.addf %33, %37 : vector<8x128xf32>
      %cst_20 = arith.constant 0.699999988 : f32
      %39 = vector.broadcast %cst_20 : f32 to vector<8x128xf32>
      %40 = math.powf %38, %39 : vector<8x128xf32>
      %cst_21 = arith.constant 16.5104389 : f32
      %41 = vector.broadcast %cst_21 : f32 to vector<8x128xf32>
      %42 = arith.cmpf olt, %40, %41 : vector<8x128xf32>
      %cst_22 = arith.constant 0.0575393513 : f32
      %43 = vector.broadcast %cst_22 : f32 to vector<8x128xf32>
      %44 = arith.mulf %43, %40 : vector<8x128xf32>
      %cst_23 = arith.constant 16.5104389 : f32
      %45 = vector.broadcast %cst_23 : f32 to vector<8x128xf32>
      %46 = arith.subf %40, %45 : vector<8x128xf32>
      %cst_24 = arith.constant 0.00201892457 : f32
      %47 = vector.broadcast %cst_24 : f32 to vector<8x128xf32>
      %48 = arith.mulf %46, %47 : vector<8x128xf32>
      %cst_25 = arith.constant 0.949999988 : f32
      %49 = vector.broadcast %cst_25 : f32 to vector<8x128xf32>
      %50 = arith.addf %49, %48 : vector<8x128xf32>
      %51 = arith.select %42, %44, %50 : vector<8x128xi1>, vector<8x128xf32>
      %c0_26 = arith.constant 0 : index
      %c0_27 = arith.constant 0 : index
      %52 = arith.index_cast %8 : i32 to index
      %c0_28 = arith.constant 0 : index
      %53 = vector.load %arg4[%c0_26, %c0_27, %52, %c0_28] : memref<1x2x8x128xf32, #tpu.memory_space<vmem>>, vector<1x1x8x128xf32>
      %54 = vector.shape_cast %53 : vector<1x1x8x128xf32> to vector<8x128xf32>
      %c0_29 = arith.constant 0 : index
      %c1_30 = arith.constant 1 : index
      %55 = arith.index_cast %8 : i32 to index
      %c0_31 = arith.constant 0 : index
      %56 = vector.load %arg4[%c0_29, %c1_30, %55, %c0_31] : memref<1x2x8x128xf32, #tpu.memory_space<vmem>>, vector<1x1x8x128xf32>
      %57 = vector.shape_cast %56 : vector<1x1x8x128xf32> to vector<8x128xf32>
      %c0_32 = arith.constant 0 : index
      %c0_33 = arith.constant 0 : index
      %58 = arith.index_cast %8 : i32 to index
      %c0_34 = arith.constant 0 : index
      %59 = vector.load %arg5[%c0_32, %c0_33, %58, %c0_34] : memref<1x2x8x128xf32, #tpu.memory_space<vmem>>, vector<1x1x8x128xf32>
      %60 = vector.shape_cast %59 : vector<1x1x8x128xf32> to vector<8x128xf32>
      %c0_35 = arith.constant 0 : index
      %c1_36 = arith.constant 1 : index
      %61 = arith.index_cast %8 : i32 to index
      %c0_37 = arith.constant 0 : index
      %62 = vector.load %arg5[%c0_35, %c1_36, %61, %c0_37] : memref<1x2x8x128xf32, #tpu.memory_space<vmem>>, vector<1x1x8x128xf32>
      %63 = vector.shape_cast %62 : vector<1x1x8x128xf32> to vector<8x128xf32>
      %c0_38 = arith.constant 0 : index
      %c0_39 = arith.constant 0 : index
      %64 = arith.index_cast %8 : i32 to index
      %c0_40 = arith.constant 0 : index
      %65 = vector.load %arg6[%c0_38, %c0_39, %64, %c0_40] : memref<1x2x8x128xf32, #tpu.memory_space<vmem>>, vector<1x1x8x128xf32>
      %66 = vector.shape_cast %65 : vector<1x1x8x128xf32> to vector<8x128xf32>
      %c0_41 = arith.constant 0 : index
      %c1_42 = arith.constant 1 : index
      %67 = arith.index_cast %8 : i32 to index
      %c0_43 = arith.constant 0 : index
      %68 = vector.load %arg6[%c0_41, %c1_42, %67, %c0_43] : memref<1x2x8x128xf32, #tpu.memory_space<vmem>>, vector<1x1x8x128xf32>
      %69 = vector.shape_cast %68 : vector<1x1x8x128xf32> to vector<8x128xf32>
      %c0_44 = arith.constant 0 : index
      %c0_45 = arith.constant 0 : index
      %70 = arith.index_cast %8 : i32 to index
      %c0_46 = arith.constant 0 : index
      %71 = vector.load %arg7[%c0_44, %c0_45, %70, %c0_46] : memref<1x2x8x128xf32, #tpu.memory_space<vmem>>, vector<1x1x8x128xf32>
      %72 = vector.shape_cast %71 : vector<1x1x8x128xf32> to vector<8x128xf32>
      %c0_47 = arith.constant 0 : index
      %c1_48 = arith.constant 1 : index
      %73 = arith.index_cast %8 : i32 to index
      %c0_49 = arith.constant 0 : index
      %74 = vector.load %arg7[%c0_47, %c1_48, %73, %c0_49] : memref<1x2x8x128xf32, #tpu.memory_space<vmem>>, vector<1x1x8x128xf32>
      %75 = vector.shape_cast %74 : vector<1x1x8x128xf32> to vector<8x128xf32>
      %76 = arith.mulf %54, %54 : vector<8x128xf32>
      %77 = arith.mulf %57, %57 : vector<8x128xf32>
      %78 = arith.addf %76, %77 : vector<8x128xf32>
      %79 = math.sqrt %78 : vector<8x128xf32>
      %80 = arith.mulf %60, %60 : vector<8x128xf32>
      %81 = arith.mulf %63, %63 : vector<8x128xf32>
      %82 = arith.addf %80, %81 : vector<8x128xf32>
      %83 = math.sqrt %82 : vector<8x128xf32>
      %84 = arith.mulf %66, %66 : vector<8x128xf32>
      %85 = arith.mulf %69, %69 : vector<8x128xf32>
      %86 = arith.addf %84, %85 : vector<8x128xf32>
      %87 = math.sqrt %86 : vector<8x128xf32>
      %88 = arith.mulf %72, %72 : vector<8x128xf32>
      %89 = arith.mulf %75, %75 : vector<8x128xf32>
      %90 = arith.addf %88, %89 : vector<8x128xf32>
      %91 = math.sqrt %90 : vector<8x128xf32>
      %92 = arith.subf %79, %83 : vector<8x128xf32>
      %93 = math.absf %92 : vector<8x128xf32>
      %94 = arith.subf %91, %87 : vector<8x128xf32>
      %95 = math.absf %94 : vector<8x128xf32>
      %96 = arith.maximumf %93, %95 : vector<8x128xf32>
      %cst_50 = arith.constant 1.000000e-15 : f32
      %97 = vector.broadcast %cst_50 : f32 to vector<8x128xf32>
      %98 = arith.maximumf %96, %97 : vector<8x128xf32>
      %cst_51 = arith.constant 0.707106769 : f32
      %99 = vector.broadcast %cst_51 : f32 to vector<8x128xf32>
      %100 = arith.mulf %99, %98 : vector<8x128xf32>
      %101 = math.sqrt %100 : vector<8x128xf32>
      %cst_52 = arith.constant 1.000000e+00 : f32
      %102 = vector.broadcast %cst_52 : f32 to vector<8x128xf32>
      %103 = arith.subf %102, %101 : vector<8x128xf32>
      %104 = math.powf %51, %103 : vector<8x128xf32>
      %105 = arith.addf %6, %104 : vector<8x128xf32>
      %c1_i32 = arith.constant 1 : i32
      %c0_53 = arith.constant 0 : index
      %c0_54 = arith.constant 0 : index
      %c0_55 = arith.constant 0 : index
      %106 = vector.load %arg8[%c0_53, %c0_54, %c0_55] : memref<1x8x128xf32, #tpu.memory_space<vmem>>, vector<1x8x128xf32>
      %107 = vector.shape_cast %106 : vector<1x8x128xf32> to vector<8x128xf32>
      %108 = vector.shape_cast %105 : vector<8x128xf32> to vector<1x8x128xf32>
      tpu.vector_store %arg8[%c0_53, %c0_54, %c0_55], %108 {strides = array<i32>} : memref<1x8x128xf32, #tpu.memory_space<vmem>>, vector<1x8x128xf32>,
    } else {
    }
    return
  }
  func.func @transform_0(%arg0: i32, %arg1: i32) -> (i32, i32, i32, i32) {
    %c0_i32 = arith.constant 0 : i32
    %c0_i32_0 = arith.constant 0 : i32
    %c0_i32_1 = arith.constant 0 : i32
    return %arg0, %c0_i32, %arg1, %c0_i32_0 : i32, i32, i32, i32
  }
  func.func @transform_1(%arg0: i32, %arg1: i32) -> (i32, i32, i32, i32) {
    %c0_i32 = arith.constant 0 : i32
    %c0_i32_0 = arith.constant 0 : i32
    %c0_i32_1 = arith.constant 0 : i32
    return %arg0, %c0_i32, %arg1, %c0_i32_0 : i32, i32, i32, i32
  }
  func.func @transform_2(%arg0: i32, %arg1: i32) -> (i32, i32, i32, i32) {
    %c0_i32 = arith.constant 0 : i32
    %c0_i32_0 = arith.constant 0 : i32
    %c0_i32_1 = arith.constant 0 : i32
    return %arg0, %c0_i32, %arg1, %c0_i32_0 : i32, i32, i32, i32
  }
  func.func @transform_3(%arg0: i32, %arg1: i32) -> (i32, i32, i32, i32) {
    %c0_i32 = arith.constant 0 : i32
    %c0_i32_0 = arith.constant 0 : i32
    %c0_i32_1 = arith.constant 0 : i32
    return %arg0, %c0_i32, %arg1, %c0_i32_0 : i32, i32, i32, i32
  }
  func.func @transform_4(%arg0: i32, %arg1: i32) -> (i32, i32, i32, i32) {
    %c0_i32 = arith.constant 0 : i32
    %c0_i32_0 = arith.constant 0 : i32
    %c0_i32_1 = arith.constant 0 : i32
    return %arg0, %c0_i32, %arg1, %c0_i32_0 : i32, i32, i32, i32
  }
  func.func @transform_5(%arg0: i32, %arg1: i32) -> (i32, i32, i32, i32) {
    %c0_i32 = arith.constant 0 : i32
    %c0_i32_0 = arith.constant 0 : i32
    %c0_i32_1 = arith.constant 0 : i32
    return %arg0, %c0_i32, %arg1, %c0_i32_0 : i32, i32, i32, i32
  }
  func.func @transform_6(%arg0: i32, %arg1: i32) -> (i32, i32, i32) {
    %c1_i32 = arith.constant 1 : i32
    %0 = arith.muli %arg0, %c1_i32 : i32
    %1 = arith.addi %0, %arg1 : i32
    %c0_i32 = arith.constant 0 : i32
    %c0_i32_0 = arith.constant 0 : i32
    %c0_i32_1 = arith.constant 0 : i32
    return %1, %c0_i32, %c0_i32_0 : i32, i32, i32
  }
}

</mosaic_0001>

<bundles_post_ra>
// kernel: tpu_custom_call.1
= control target key start
LH: loop header
LB: loop body
LE: loop exit
PB: predicated region body
PF: predicated region fallthrough
CT: control target
= control target key end

     0   :  { %s2019_s0 = inlined_call_operand.hbm [shape: f32[2,3,8,128], index: 0, kind: input, shape index: {}]   ;;  %s2020_s1 = inlined_call_operand.hbm [shape: f32[2,3,8,128], index: 1, kind: input, shape index: {}]   ;;  %s2021_s2 = inlined_call_operand.hbm [shape: f32[2,2,8,128], index: 2, kind: input, shape index: {}]   ;;  %s2022_s3 = inlined_call_operand.hbm [shape: f32[2,2,8,128], index: 3, kind: input, shape index: {}]   ;;  %s2023_s4 = inlined_call_operand.hbm [shape: f32[2,2,8,128], index: 4, kind: input, shape index: {}]   ;;  %s2024_s5 = inlined_call_operand.hbm [shape: f32[2,2,8,128], index: 5, kind: input, shape index: {}]   ;;  %s2025_s6 = inlined_call_operand.hbm [shape: f32[2,8,128], index: 6, kind: output, shape index: {}]  }
   0x1   :  { %2042 = sst [smem:[#allocation25_spill]] %s2020_s1 }
   0x2   :  { %2043 = sst [smem:[#allocation26_spill]] %s2022_s3 }
   0x3   :  { %2044 = sst [smem:[#allocation27_spill]] %s2025_s6 }
   0x4   :  { %11 = vsyncpa [#allocation3], 0 }
   0x5   :  { %13 = vsyncpa [#allocation3 + $0x1], 0 }
   0x6   :  { %14 = vsyncpa [#allocation6], 0 }
   0x7   :  { %16 = vsyncpa [#allocation6 + $0x1], 0 }
   0x8   :  { %17 = vsyncpa [#allocation9], 0 }
   0x9   :  { %19 = vsyncpa [#allocation9 + $0x1], 0 }
   0xa   :  { %20 = vsyncpa [#allocation12], 0 }
   0xb   :  { %22 = vsyncpa [#allocation12 + $0x1], 0 }
   0xc   :  { %23 = vsyncpa [#allocation4], 0 }
   0xd   :  { %25 = vsyncpa [#allocation4 + $0x1], 0  ;;  %s1542_s21 = smov 0   ;;  %s1544_s22 = smov 0  }
   0xe   :  { %s1546_s23 = smov 0   ;;  %s1548_s24 = smov 0  }
   0xf   :  { %s1550_s25 = smov 0   ;;  %s1552_s26 = smov 0  }
  0x10 LB: > { %2045 = sst [smem:[#allocation19_spill]] %s1474_s21  ;;  %s1573_s27 = sadd.s32 4294967295, %s1494_s26   ;;  %s1494_s26 = sphi %s1552_s26, %s31_s26   ;;  %s1490_s25 = sphi %s1550_s25, %s2090_s25   ;;  %s1486_s24 = sphi %s1548_s24, %s2089_s24   ;;  %s1482_s23 = sphi %s1546_s23, %s2085_s23   ;;  %s1478_s22 = sphi %s1544_s22, %s2088_s22   ;;  %s1474_s21 = sphi %s1542_s21, %s2087_s21  }
  0x11   : > { %2046 = sst [smem:[#allocation20_spill]] %s1482_s23  ;;  %s975_s28 = sadd.s32 4294967294, %s1494_s26  }
  0x12   : > { %2047 = sst [smem:[#allocation21_spill]] %s1494_s26  ;;  %s43_s29 = sadd.s32 1, %s1490_s25 }
  0x13   : > { %s52_s30 = sadd.s32 1, %s1482_s23  ;;  %p45_p0 = scmp.ge.s32.totalorder %s43_s29, 2 }
  0x14   : > { %p59_p1 = scmp.ne.s32.totalorder %s1482_s23, %s1478_s22  ;;  %p60_p2 = scmp.eq.s32.totalorder %s1494_s26, 0 }
  0x15   : > { %p65_p3 = scmp.ne.s32.totalorder %s1478_s22, %s1474_s21  ;;  %s2092_s29 = smov (%p45_p0, %s43_s29), 0 }
  0x16   : > { %2048 = sst [smem:[#allocation22_spill]] %s2092_s29  ;;  %p1585_p4 = por %p60_p2, %p59_p1 }
  0x17   : > { %p66_p5 = scmp.eq.s32.totalorder %s1573_s27, 0  ;;  %s47_s8 = ssub.s32 %s1490_s25, %s2092_s29 }
  0x18   : > { %p231_p6 = scmp.eq.s32.totalorder %s1573_s27, 1  ;;  %p50_p7 = scmp.eq.s32.totalorder %s47_s8, 0 }
  0x19   : > { %p1593_p8 = por %p66_p5, %p65_p3  ;;  %p237_p10 = scmp.eq.s32.totalorder %s975_s28, 1 }
  0x1a   : > { %p1597_p9 = por %p231_p6, %p59_p1  ;;  %p1144_p13 = scmp.lt.s32.totalorder %s1494_s26, 2 }
  0x1b   : > { %s2050_s9 = scalar_select %p1593_p8, 1, 0 }
  0x1c   : > { %s2051_s10 = scalar_select %p1597_p9, 1, 0 }
  0x1d   : > { %s1602_s11 = scalar_select %p50_p7, %s1482_s23, %s52_s30  }
  0x1e   : > { %p1604_p11 = por %p237_p10, %p65_p3  ;;  %s1611_s13 = sand.u32 1, %s1482_s23  }
  0x1f   : > { %2052 = sst [smem:[#allocation23_spill]] %s1602_s11  ;;  %s2026_s14 = smul.u32 24, %s1611_s13 }
  0x20   : > { %s2053_s12 = scalar_select %p1604_p11, 1, 0 }
  0x21   : > { %s2027_s15 = smul.u32 384, %s1490_s25  ;;  %p1617_p0 = pnand %p1144_p13, %p1585_p4 }
  0x22   : > { %2054 = sst [smem:[#allocation24_spill]] %s2053_s12  ;;  %s2029_s17 = sand.u32 1, %s1494_s26  }
  0x23   : > { %s2056_s1 = sld [smem:[#allocation25_spill]]  ;;  %s283_s28 = scalar_lea.vmem [#allocation5], %s2026_s14 }
  0x24   : > { %s291_s30 = sshll.u32 %s283_s28, 4  ;;  %s1637_s7 = scalar_lea.sflag [#allocation6], %s2029_s17  ;;  %s1632_s30 = int_to_ptr.vmem [resolvable:$true] %s291_s30 }
  0x25   : > { %p1643_p4 = pneg %p1617_p0 }
  0x29   : > { %s1627_s20 = scalar_lea.hbm %s2056_s1, %s2027_s15  ;;  %s1225_s14 = scalar_lea.hbm %s2056_s1, 768 }
  0x2a   : > { %s1220_s8 = scalar_lea.hbm %s1627_s20, 384  ;;  %p1226_p7 = scmp.lt.u32.totalorder %s1627_s20, %s2056_s1 }
  0x2b   : > { %p1221_p3 = scmp.ne.s32.totalorder %s1627_s20, %s1220_s8  ;;  %p1227_p10 = scmp.lt.u32.totalorder %s1225_s14, %s1220_s8 }
  0x2c   : > { %p1229_p12 = scmp.lt.u32.totalorder %s1220_s8, %s1627_s20 }
  0x2d   : > { %p1223_p5 = pnand %p1643_p4, %p1221_p3  ;;  %p1228_p13 = por %p1227_p10, %p1226_p7 }
  0x2f   : > { %p1224_p6 = pneg %p1223_p5  ;;  %p1230_p1 = por %p1229_p12, %p1228_p13 }
  0x31   : > { %p1231_p2 = pnand %p1230_p1, %p1224_p6 }
  0x33   : > { %1234 = shalt.err (!%p1231_p2)
}
  0x34   : > { %s1235_s17 = scalar_lea.vmem %s1632_s30, 384  ;;  %s1496_s19 = smov [#allocation5]  }
  0x35   : > { %p1236_p3 = scmp.ne.s32.totalorder %s1632_s30, %s1235_s17  ;;  %s1240_s28 = sshll.u32 %s1496_s19, 4  ;;  %s1241_s28 = int_to_ptr.vmem [resolvable:$false] %s1240_s28 }
  0x36   : > { %s1242_s29 = scalar_lea.vmem %s1241_s28, 768  ;;  %p1243_p9 = scmp.lt.s32.totalorder %s1632_s30, %s1241_s28 }
  0x37   : > { %p1238_p5 = pnand %p1236_p3, %p1643_p4  ;;  %p1244_p8 = scmp.lt.s32.totalorder %s1242_s29, %s1235_s17 }
  0x39   : > { %p1239_p11 = pneg %p1238_p5  ;;  %p1245_p7 = por %p1244_p8, %p1243_p9 }
  0x3b   : > { %p1246_p10 = pnand %p1245_p7, %p1239_p11 }
  0x3d   : > { %1249 = shalt.err (!%p1246_p10)
}
  0x3e   : > { %s2032_s14 = smov 128   ;;  %s2034_s15 = smov 8  }
  0x3f   : > { %1127 = dma.hbm_to_vmem [thread:$0]  (!%p1617_p0), %s1627_s20, 384, %s1632_s30, %s1637_s7, %s2032_s14, %s2032_s14, %s2034_s15  }
  0x40   : > { %p2058_p8 = scmp.lt.s32.totalorder %s1494_s26, 3  ;;  %p2059_p9 = scmp.ge.s32.totalorder %s1494_s26, 1 }
  0x41   : > { %s1679_s8 = sshll.u32 %s1611_s13, 4  ;;  %s1682_s19 = sshll.u32 %s1490_s25, 8 }
  0x42   : > { %p1674_p11 = pnand %p2059_p9, %p2058_p8  ;;  %s2061_s3 = sld [smem:[#allocation26_spill]] }
  0x43   : > { %s327_s20 = scalar_lea.vmem [#allocation8], %s1679_s8  ;;  %s2062_s14 = sand.u32 1, %s1494_s26  }
  0x44   : > { %s2060_s17 = scalar_select %p1674_p11, 1, 0 }
  0x45   : > { %s335_s30 = sshll.u32 %s327_s20, 4  ;;  %s1695_s15 = scalar_lea.sflag [#allocation9], %s2062_s14  ;;  %s1691_s30 = int_to_ptr.vmem [resolvable:$true] %s335_s30 }
  0x48   : > { %s1688_s1 = scalar_lea.hbm %s2061_s3, %s1682_s19  ;;  %s1255_s29 = scalar_lea.hbm %s2061_s3, 512 }
  0x49   : > { %s1250_s11 = scalar_lea.hbm %s1688_s1, 256  ;;  %p1256_p6 = scmp.lt.u32.totalorder %s1688_s1, %s2061_s3 }
  0x4a   : > { %p1251_p12 = scmp.ne.s32.totalorder %s1688_s1, %s1250_s11  ;;  %p1257_p13 = scmp.lt.u32.totalorder %s1255_s29, %s1250_s11 }
  0x4b   : > { %p1259_p5 = scmp.lt.u32.totalorder %s1250_s11, %s1688_s1 }
  0x4c   : > { %p1253_p1 = pnand %p1251_p12, %p1643_p4  ;;  %p1258_p3 = por %p1257_p13, %p1256_p6 }
  0x4e   : > { %p1254_p2 = pneg %p1253_p1  ;;  %p1260_p7 = por %p1259_p5, %p1258_p3 }
  0x50   : > { %p1261_p10 = pnand %p1260_p7, %p1254_p2 }
  0x52   : > { %1264 = shalt.err (!%p1261_p10)
}
  0x53   : > { %s1265_s14 = scalar_lea.vmem %s1691_s30, 256  ;;  %s1499_s23 = smov [#allocation8]  }
  0x54   : > { %p1266_p8 = scmp.ne.s32.totalorder %s1691_s30, %s1265_s14  ;;  %s1270_s20 = sshll.u32 %s1499_s23, 4  ;;  %s1271_s20 = int_to_ptr.vmem [resolvable:$false] %s1270_s20 }
  0x55   : > { %s1272_s21 = scalar_lea.vmem %s1271_s20, 512  ;;  %p1273_p1 = scmp.lt.s32.totalorder %s1691_s30, %s1271_s20 }
  0x56   : > { %p1268_p9 = pnand %p1266_p8, %p1643_p4  ;;  %p1274_p11 = scmp.lt.s32.totalorder %s1272_s21, %s1265_s14 }
  0x58   : > { %p1269_p12 = pneg %p1268_p9  ;;  %p1275_p6 = por %p1274_p11, %p1273_p1 }
  0x5a   : > { %p1276_p13 = pnand %p1275_p6, %p1269_p12 }
  0x5c   : > { %1279 = shalt.err (!%p1276_p13)
}
  0x5d   : > { %s2063_s11 = smov 8   ;;  %s2064_s12 = smov 128  }
  0x5e   : > { %1133 = dma.hbm_to_vmem [thread:$0]  (!%p1617_p0), %s1688_s1, 256, %s1691_s30, %s1695_s15, %s2064_s12, %s2064_s12, %s2063_s11  }
  0x5f   : > { %s2065_s28 = smul.u32 384, %s1490_s25  ;;  %s258_s26 = scalar_lea.sflag [#allocation3], %s1611_s13 }
  0x60   : > { %s2066_s20 = smul.u32 24, %s1611_s13 }
  0x61   : > { %s1727_s14 = scalar_lea.hbm %s2019_s0, %s2065_s28  ;;  %s1285_s28 = scalar_lea.hbm %s2019_s0, 768 }
  0x62   : > { %s261_s21 = scalar_lea.vmem [#allocation2], %s2066_s20  ;;  %s1280_s6 = scalar_lea.hbm %s1727_s14, 384 }
  0x63   : > { %s269_s3 = sshll.u32 %s261_s21, 4  ;;  %p1281_p11 = scmp.ne.s32.totalorder %s1727_s14, %s1280_s6  ;;  %s1731_s3 = int_to_ptr.vmem [resolvable:$true] %s269_s3 }
  0x64   : > { %p1286_p5 = scmp.lt.u32.totalorder %s1727_s14, %s2019_s0  ;;  %p1287_p7 = scmp.lt.u32.totalorder %s1285_s28, %s1280_s6 }
  0x65   : > { %p1283_p2 = pnand %p1281_p11, %p1643_p4  ;;  %p1289_p8 = scmp.lt.u32.totalorder %s1280_s6, %s1727_s14 }
  0x66   : > { %p1288_p10 = por %p1287_p7, %p1286_p5 }
  0x67   : > { %p1284_p3 = pneg %p1283_p2 }
  0x68   : > { %p1290_p9 = por %p1289_p8, %p1288_p10 }
  0x6a   : > { %p1291_p12 = pnand %p1290_p9, %p1284_p3 }
  0x6c   : > { %1294 = shalt.err (!%p1291_p12)
}
  0x6d   : > { %s1295_s20 = scalar_lea.vmem %s1731_s3, 384  ;;  %s1500_s21 = smov [#allocation2]  }
  0x6e   : > { %p1296_p1 = scmp.ne.s32.totalorder %s1731_s3, %s1295_s20  ;;  %s1300_s1 = sshll.u32 %s1500_s21, 4  ;;  %s1301_s1 = int_to_ptr.vmem [resolvable:$false] %s1300_s1 }
  0x6f   : > { %s1302_s30 = scalar_lea.vmem %s1301_s1, 768  ;;  %p1303_p11 = scmp.lt.s32.totalorder %s1731_s3, %s1301_s1 }
  0x70   : > { %p1298_p6 = pnand %p1296_p1, %p1643_p4  ;;  %p1304_p2 = scmp.lt.s32.totalorder %s1302_s30, %s1295_s20 }
  0x72   : > { %p1299_p13 = pneg %p1298_p6  ;;  %p1305_p5 = por %p1304_p2, %p1303_p11 }
  0x74   : > { %p1306_p7 = pnand %p1305_p5, %p1299_p13 }
  0x76   : > { %1309 = shalt.err (!%p1306_p7)
}
  0x77   : > { %1124 = dma.hbm_to_vmem [thread:$0]  (!%p1617_p0), %s1727_s14, 384, %s1731_s3, %s258_s26, %s2064_s12, %s2064_s12, %s2063_s11  }
  0x78   : > { %s1764_s29 = scalar_lea.hbm %s2021_s2, %s1682_s19  ;;  %s305_s23 = scalar_lea.vmem [#allocation7], %s1679_s8 }
  0x79   : > { %s313_s20 = sshll.u32 %s305_s23, 4  ;;  %s1310_s21 = scalar_lea.hbm %s1764_s29, 256  ;;  %s1767_s20 = int_to_ptr.vmem [resolvable:$true] %s313_s20 }
  0x7a   : > { %p1311_p3 = scmp.ne.s32.totalorder %s1764_s29, %s1310_s21  ;;  %s1315_s26 = scalar_lea.hbm %s2021_s2, 512 }
  0x7b   : > { %p1316_p9 = scmp.lt.u32.totalorder %s1764_s29, %s2021_s2  ;;  %p1317_p12 = scmp.lt.u32.totalorder %s1315_s26, %s1310_s21 }
  0x7c   : > { %p1313_p10 = pnand %p1311_p3, %p1643_p4  ;;  %p1319_p6 = scmp.lt.u32.totalorder %s1310_s21, %s1764_s29 }
  0x7d   : > { %p1318_p1 = por %p1317_p12, %p1316_p9 }
  0x7e   : > { %p1314_p8 = pneg %p1313_p10 }
  0x7f   : > { %p1320_p13 = por %p1319_p6, %p1318_p1 }
  0x81   : > { %p1321_p11 = pnand %p1320_p13, %p1314_p8 }
  0x83   : > { %1324 = shalt.err (!%p1321_p11)
}
  0x84   : > { %s1325_s6 = scalar_lea.vmem %s1767_s20, 256  ;;  %s1501_s28 = smov [#allocation7]  }
  0x85   : > { %p1326_p2 = scmp.ne.s32.totalorder %s1767_s20, %s1325_s6  ;;  %s1330_s23 = sshll.u32 %s1501_s28, 4  ;;  %s1331_s23 = int_to_ptr.vmem [resolvable:$false] %s1330_s23 }
  0x86   : > { %s1332_s1 = scalar_lea.vmem %s1331_s23, 512  ;;  %p1333_p3 = scmp.lt.s32.totalorder %s1767_s20, %s1331_s23 }
  0x87   : > { %p1328_p5 = pnand %p1326_p2, %p1643_p4  ;;  %p1334_p10 = scmp.lt.s32.totalorder %s1332_s1, %s1325_s6 }
  0x89   : > { %p1329_p7 = pneg %p1328_p5  ;;  %p1335_p9 = por %p1334_p10, %p1333_p3 }
  0x8b   : > { %p1336_p12 = pnand %p1335_p9, %p1329_p7 }
  0x8d   : > { %1339 = shalt.err (!%p1336_p12)
}
  0x8e   : > { %1130 = dma.hbm_to_vmem [thread:$0]  (!%p1617_p0), %s1764_s29, 256, %s1767_s20, %s1637_s7, %s2064_s12, %s2064_s12, %s2063_s11  }
  0x8f   : > { %s1798_s26 = scalar_lea.hbm %s2023_s4, %s1682_s19  ;;  %s349_s14 = scalar_lea.vmem [#allocation10], %s1679_s8 }
  0x90   : > { %s357_s30 = sshll.u32 %s349_s14, 4  ;;  %s1340_s6 = scalar_lea.hbm %s1798_s26, 256  ;;  %s1801_s30 = int_to_ptr.vmem [resolvable:$true] %s357_s30 }
  0x91   : > { %p1341_p8 = scmp.ne.s32.totalorder %s1798_s26, %s1340_s6  ;;  %s1345_s29 = scalar_lea.hbm %s2023_s4, 512 }
  0x92   : > { %p1346_p13 = scmp.lt.u32.totalorder %s1798_s26, %s2023_s4  ;;  %p1347_p11 = scmp.lt.u32.totalorder %s1345_s29, %s1340_s6 }
  0x93   : > { %p1343_p1 = pnand %p1341_p8, %p1643_p4  ;;  %p1349_p5 = scmp.lt.u32.totalorder %s1340_s6, %s1798_s26 }
  0x94   : > { %p1348_p2 = por %p1347_p11, %p1346_p13 }
  0x95   : > { %p1344_p6 = pneg %p1343_p1 }
  0x96   : > { %p1350_p7 = por %p1349_p5, %p1348_p2 }
  0x98   : > { %p1351_p3 = pnand %p1350_p7, %p1344_p6 }
  0x9a   : > { %1354 = shalt.err (!%p1351_p3)
}
  0x9b   : > { %s1355_s1 = scalar_lea.vmem %s1801_s30, 256  ;;  %s1502_s21 = smov [#allocation10]  }
  0x9c   : > { %p1356_p10 = scmp.ne.s32.totalorder %s1801_s30, %s1355_s1  ;;  %s1360_s3 = sshll.u32 %s1502_s21, 4  ;;  %s1361_s3 = int_to_ptr.vmem [resolvable:$false] %s1360_s3 }
  0x9d   : > { %s1362_s14 = scalar_lea.vmem %s1361_s3, 512  ;;  %p1363_p8 = scmp.lt.s32.totalorder %s1801_s30, %s1361_s3 }
  0x9e   : > { %p1358_p9 = pnand %p1356_p10, %p1643_p4  ;;  %p1364_p1 = scmp.lt.s32.totalorder %s1362_s14, %s1355_s1 }
  0xa0   : > { %p1359_p12 = pneg %p1358_p9  ;;  %p1365_p13 = por %p1364_p1, %p1363_p8 }
  0xa2   : > { %p1366_p11 = pnand %p1365_p13, %p1359_p12 }
  0xa4   : > { %1369 = shalt.err (!%p1366_p11)
}
  0xa5   : > { %1136 = dma.hbm_to_vmem [thread:$0]  (!%p1617_p0), %s1798_s26, 256, %s1801_s30, %s1695_s15, %s2064_s12, %s2064_s12, %s2063_s11  }
  0xa6   : > { %s1832_s7 = scalar_lea.hbm %s2024_s5, %s1682_s19  ;;  %s371_s29 = scalar_lea.vmem [#allocation11], %s1679_s8 }
  0xa7   : > { %s379_s20 = sshll.u32 %s371_s29, 4  ;;  %s368_s23 = scalar_lea.sflag [#allocation12], %s1611_s13  ;;  %s1835_s20 = int_to_ptr.vmem [resolvable:$true] %s379_s20 }
  0xa8   : > { %s1370_s1 = scalar_lea.hbm %s1832_s7, 256  ;;  %s1375_s30 = scalar_lea.hbm %s2024_s5, 512 }
  0xa9   : > { %p1371_p6 = scmp.ne.s32.totalorder %s1832_s7, %s1370_s1  ;;  %p1376_p7 = scmp.lt.u32.totalorder %s1832_s7, %s2024_s5 }
  0xaa   : > { %p1377_p3 = scmp.lt.u32.totalorder %s1375_s30, %s1370_s1  ;;  %p1379_p9 = scmp.lt.u32.totalorder %s1370_s1, %s1832_s7 }
  0xab   : > { %p1373_p2 = pnand %p1371_p6, %p1643_p4 }
  0xac   : > { %p1378_p10 = por %p1377_p3, %p1376_p7 }
  0xad   : > { %p1374_p5 = pneg %p1373_p2 }
  0xae   : > { %p1380_p12 = por %p1379_p9, %p1378_p10 }
  0xb0   : > { %p1381_p8 = pnand %p1380_p12, %p1374_p5 }
  0xb2   : > { %1384 = shalt.err (!%p1381_p8)
}
  0xb3   : > { %s1385_s8 = scalar_lea.vmem %s1835_s20, 256  ;;  %s1503_s3 = smov [#allocation11]  }
  0xb4   : > { %p1386_p1 = scmp.ne.s32.totalorder %s1835_s20, %s1385_s8  ;;  %s1390_s14 = sshll.u32 %s1503_s3, 4  ;;  %s1391_s14 = int_to_ptr.vmem [resolvable:$false] %s1390_s14 }
  0xb5   : > { %s1392_s6 = scalar_lea.vmem %s1391_s14, 512  ;;  %p1393_p6 = scmp.lt.s32.totalorder %s1835_s20, %s1391_s14 }
  0xb6   : > { %p1388_p13 = pnand %p1386_p1, %p1643_p4  ;;  %p1394_p2 = scmp.lt.s32.totalorder %s1392_s6, %s1385_s8 }
  0xb8   : > { %p1389_p11 = pneg %p1388_p13  ;;  %p1395_p7 = por %p1394_p2, %p1393_p6 }
  0xba   : > { %p1396_p3 = pnand %p1395_p7, %p1389_p11 }
  0xbc   : > { %1399 = shalt.err (!%p1396_p3)
}
  0xbd   : > { %1139 = dma.hbm_to_vmem [thread:$0]  (!%p1617_p0), %s1832_s7, 256, %s1835_s20, %s368_s23, %s2064_s12, %s2064_s12, %s2063_s11  }
  0xbe   : > { %p2067_p4 = scmp.ne.s32.totalorder %s2060_s17, 0 }
  0xbf   : > { %s1867_s18 = sand.u32 (!%p2067_p4), 1, %s1478_s22   ;;  %p2068_p5 = scmp.ne.s32.totalorder (!%p2067_p4), %s2050_s9, 0 }
  0xc0   : > { %391 = sbr.rel (%p2067_p4) target bundleno = 324 (0x144), region = 44  ;;  %s394_s29 = scalar_lea.sflag (!%p2067_p4), [#allocation3], %s1867_s18 }
  0xc1   : > { %s1028_s28 = smul.u32 (!%p2067_p4), 24, %s1867_s18 }
  0xc3   : > { %s397_s16 = scalar_lea.vmem (!%p2067_p4), [#allocation2], %s1028_s28 }
  0xc7   : > { %1453 = dma.done.wait (%p2068_p5), %s394_s29, 384  }
  0xc8   : > { %1455 = vsyncadd (%p2068_p5), %s394_s29, 4294966912  ;;  %s402_s13 = sand.u32 1, %s1573_s27   ;;  %s406_s17 = scalar_lea.vmem [#allocation5], %s1028_s28 }
  0xc9   : > { %s403_s11 = scalar_lea.sflag [#allocation6], %s402_s13 }
  0xca   : > { %1457 = dma.done.wait (%p2068_p5), %s403_s11, 640  }
  0xcb   : > { %1459 = vsyncadd (%p2068_p5), %s403_s11, 4294966656  ;;  %s1881_s12 = sshll.u32 %s1867_s18, 4  ;;  %s421_s20 = scalar_lea.sflag [#allocation9], %s402_s13 }
  0xcc   : > { %s415_s7 = scalar_lea.vmem [#allocation7], %s1881_s12  ;;  %s424_s23 = scalar_lea.vmem [#allocation8], %s1881_s12 }
  0xcd   : > { %1461 = dma.done.wait (%p2068_p5), %s421_s20, 512  }
  0xce   : > { %1463 = vsyncadd (%p2068_p5), %s421_s20, 4294966784  ;;  %s433_s27 = scalar_lea.vmem [#allocation10], %s1881_s12  ;;  %s439_s1 = scalar_lea.sflag [#allocation12], %s1867_s18 }
  0xcf   : > { %s442_s15 = scalar_lea.vmem [#allocation11], %s1881_s12 }
  0xd0   : > { %1465 = dma.done.wait (%p2068_p5), %s439_s1, 256  }
  0xd1   : > { %1467 = vsyncadd (%p2068_p5), %s439_s1, 4294967040  ;;  %v510_v0 = vld [vmem:[%s397_s16] sm:$0xff]  ;;  %v511_v1 = vld [vmem:[%s406_s17] sm:$0xff]  ;;  %s997_s9 = sshll.u32 %s1867_s18, 3  ;;  %s1017_s19 = sshll.u32 %s1486_s24, 7 }
  0xd2   : > { %v998_v2 = vld [vmem:[%s397_s16 + $0x8] sm:$0xff]  ;;  %v512_v3 = vsub.f32 %v510_v0, %v511_v1  ;;  %v999_v4 = vld [vmem:[%s406_s17 + $0x8] sm:$0xff]  ;;  %v1000_v5 = vld [vmem:[%s397_s16 + $0x10] sm:$0xff]  ;;  %s495_s26 = scalar_lea.vmem [#allocation13], %s997_s9  ;;  %s2077_s3 = sld [smem:[#allocation27_spill]] }
  0xd3   : > { %v1001_v6 = vld [vmem:[%s406_s17 + $0x10] sm:$0xff]  ;;  %v518_v7 = vsub.f32 %v998_v2, %v999_v4  ;;  %s758_s30 = sshll.u32 %s495_s26, 4  ;;  %s744_s6 = scalar_lea.sflag [#allocation4], %s1867_s18  ;;  %s1967_s30 = int_to_ptr.vmem [resolvable:$true] %s758_s30 }
  0xd4   : > { %v524_v8 = vsub.f32 %v1000_v5, %v1001_v6  ;;  %v552_v9 = vld [vmem:[%s415_s7] sm:$0xff]  ;;  %v1003_v10 = vld [vmem:[%s415_s7 + $0x8] sm:$0xff]  ;;  %v525_v12 = vmul.f32 %v512_v3, %v512_v3  ;;  %s1400_s28 = scalar_lea.vmem %s1967_s30, 128  ;;  %p2078_p10 = scmp.ne.s32.totalorder %s2051_s10, 0 }
  0xd5   : > { %v555_v11 = vld [vmem:[%s424_s23] sm:$0xff]  ;;  %v1004_v13 = vld [vmem:[%s424_s23 + $0x8] sm:$0xff]  ;;  %v564_v15 = vmul.f32 %v552_v9, %v552_v9  ;;  %v565_v16 = vmul.f32 %v1003_v10, %v1003_v10  ;;  %v534_v18 = vmul.f32 %v518_v7, %v518_v7  ;;  %p1401_p0 = scmp.ne.s32.totalorder %s1967_s30, %s1400_s28  ;;  %s1506_s24 = smov [#allocation13]  }
  0xd6   : > { %v558_v14 = vld [vmem:[%s433_s27] sm:$0xff]  ;;  %v574_v17 = vmul.f32 %v555_v11, %v555_v11  ;;  %v535_v19 = vmul.f32 %v524_v8, %v524_v8  ;;  %v1005_v20 = vld [vmem:[%s433_s27 + $0x8] sm:$0xff]  ;;  %v575_v23 = vmul.f32 %v1004_v13, %v1004_v13  ;;  %v526_v24 = vadd.f32 1e-15, %v525_v12  ;;  %s1404_s29 = sshll.u32 %s1506_s24, 4  ;;  %s1405_s29 = int_to_ptr.vmem [resolvable:$false] %s1404_s29 }
  0xd7   : > { %v561_v21 = vld [vmem:[%s442_s15] sm:$0xff]  ;;  %v1006_v22 = vld [vmem:[%s442_s15 + $0x8] sm:$0xff]  ;;  %v566_v25 = vadd.f32 %v565_v16, %v564_v15  ;;  %v584_v28 = vmul.f32 %v558_v14, %v558_v14  ;;  %v585_v29 = vmul.f32 %v1005_v20, %v1005_v20  ;;  %p1402_p9 = pnand %p1401_p0, %p2078_p10  ;;  %s1406_s16 = scalar_lea.vmem %s1405_s29, 256 }
  0xd8   : > { %v536_v26 = vadd.f32 %v535_v19, %v534_v18  ;;  %v576_v27 = vadd.f32 %v575_v23, %v574_v17  ;;  %1198 = vrsqrt.f32 %v526_v24  ;;  %v594_v30 = vmul.f32 %v561_v21, %v561_v21  ;;  %s1972_s14 = scalar_lea.hbm %s2077_s3, %s1017_s19  ;;  %p1407_p8 = scmp.lt.s32.totalorder %s1967_s30, %s1405_s29 }
  0xd9   : > { %v595_v31 = vmul.f32 %v1006_v22, %v1006_v22  ;;  %v586_v32 = vadd.f32 %v585_v29, %v584_v28  ;;  %vm529_vm0 = vcmp.eq.f32.partialorder %v526_v24, inf  ;;  %vm531_vm1 = vcmp.eq.f32.partialorder %v526_v24, 0.0  ;;  %p1403_p12 = pneg %p1402_p9  ;;  %p1408_p1 = scmp.lt.s32.totalorder %s1406_s16, %s1400_s28 }
  0xda   : > { %1200 = vrsqrt.f32 %v536_v26  ;;  %v532_v35 = vand.u32 2147483648, %v526_v24  ;;  %vm539_vm2 = vcmp.eq.f32.partialorder %v536_v26, inf  ;;  %vm541_vm3 = vcmp.eq.f32.partialorder %v536_v26, 0.0 }
  0xdb   : > { %1202 = vrsqrt.f32 %v566_v25  ;;  %v596_v33 = vadd.f32 %v595_v31, %v594_v30  ;;  %v542_v38 = vand.u32 2147483648, %v536_v26  ;;  %vm569_vm4 = vcmp.eq.f32.partialorder %v566_v25, inf  ;;  %p1409_p13 = por %p1408_p1, %p1407_p8 }
  0xdc   : > { %1204 = vrsqrt.f32 %v576_v27  ;;  %vm571_vm5 = vcmp.eq.f32.partialorder %v566_v25, 0.0  ;;  %v572_v41 = vand.u32 2147483648, %v566_v25  ;;  %vm579_vm6 = vcmp.eq.f32.partialorder %v576_v27, inf }
  0xdd   : > { %1206 = vrsqrt.f32 %v586_v32  ;;  %v582_v45 = vand.u32 2147483648, %v576_v27  ;;  %vm581_vm7 = vcmp.eq.f32.partialorder %v576_v27, 0.0  ;;  %vm589_vm8 = vcmp.eq.f32.partialorder %v586_v32, inf  ;;  %p1410_p11 = pnand %p1409_p13, %p1403_p12 }
  0xde   : > { %1208 = vrsqrt.f32 %v596_v33  ;;  %v592_v55 = vand.u32 2147483648, %v586_v32  ;;  %vm591_vm9 = vcmp.eq.f32.partialorder %v586_v32, 0.0  ;;  %vm599_vm10 = vcmp.eq.f32.partialorder %v596_v33, inf }
  0xdf   : > { %v602_v60 = vand.u32 2147483648, %v596_v33  ;;  %vm601_vm11 = vcmp.eq.f32.partialorder %v596_v33, 0.0 }
  0xe2   : > { %v1199_v34 = vpop.eup %1198 }
  0xe3   : > { %v528_v37 = vmul.f32 %v1199_v34, %v526_v24 }
  0xe4   : > { %v1201_v36 = vpop.eup %1200 }
  0xe5   : > { %v1203_v39 = vpop.eup %1202  ;;  %v538_v40 = vmul.f32 %v1201_v36, %v536_v26  ;;  %v530_v43 = vsel %vm529_vm0, %v526_v24, %v528_v37  ;;  %v501_v37 = vlaneseq }
  0xe6   : > { %v1205_v42 = vpop.eup %1204  ;;  %v568_v44 = vmul.f32 %v1203_v39, %v566_v25  ;;  %v533_v46 = vsel %vm531_vm1, %v532_v35, %v530_v43 }
  0xe7   : > { %v540_v47 = vsel %vm539_vm2, %v536_v26, %v538_v40  ;;  %v578_v48 = vmul.f32 %v1205_v42, %v576_v27  ;;  %v1207_v51 = vpop.eup %1206  ;;  %v1504_v40 = vmov 2139095040   ;;  %v504_v42 = vshrl.u32 %v501_v37, 7 }
  0xe8   : > { %v543_v49 = vsel %vm541_vm3, %v542_v38, %v540_v47  ;;  %v570_v50 = vsel %vm569_vm4, %v566_v25, %v568_v44  ;;  %v1209_v56 = vpop.eup %1208  ;;  %v588_v58 = vmul.f32 %v1207_v51, %v586_v32 }
  0xe9   : > { %v544_v52 = vadd.f32 %v543_v49, %v533_v46  ;;  %v573_v53 = vsel %vm571_vm5, %v572_v41, %v570_v50  ;;  %v580_v54 = vsel %vm579_vm6, %v576_v27, %v578_v48  ;;  %v598_v62 = vmul.f32 %v1209_v56, %v596_v33 }
  0xea   : > { %v583_v57 = vsel %vm581_vm7, %v582_v45, %v580_v54  ;;  %v590_v61 = vsel %vm589_vm8, %v586_v32, %v588_v58  ;;  %v1505_v45 = vmov 0   ;;  %v502_v48 = vand.u32 127, %v501_v37 }
  0xeb   : > { %v1033_v59 = vand.u32 2147483647, %v544_v52  ;;  %v604_v63 = vsub.f32 %v573_v53, %v583_v57  ;;  %v593_v0 = vsel %vm591_vm9, %v592_v55, %v590_v61  ;;  %v600_v1 = vsel %vm599_vm10, %v596_v33, %v598_v62 }
  0xec   : > { %v603_v2 = vsel %vm601_vm11, %v602_v60, %v600_v1  ;;  %vm1037_vm12 = vcmp.lt.f32.partialorder %v544_v52, 0  ;;  %vm1038_vm13 = vcmp.eq.f32.partialorder %v544_v52, 0  ;;  %vm1050_vm15 = vcmp.ne.f32.partialorder %v544_v52, %v544_v52 }
  0xed   : > { %1210 = vlog2.f32 %v1033_v59  ;;  %v605_v3 = vand.u32 2147483647, %v604_v63  ;;  %v606_v4 = vsub.f32 %v603_v2, %v593_v0  ;;  %vm1042_vm14 = vcmp.eq.f32.partialorder %v1033_v59, 2139095040 }
  0xee   : > { %vm1039_vm0 = vcmp.eq.f32.partialorder %v544_v52, 1065353216  ;;  %v508_v49 = vmul.u32 128, %v504_v42 }
  0xef   : > { %v607_v5 = vand.u32 2147483647, %v606_v4 }
  0xf0   : > { %v509_v56 = vadd.s32 %v508_v49, %v502_v48 }
  0xf1   : > { %v608_v6 = vmax.f32.f32 %v605_v3, %v607_v5 }
  0xf3   : > { %v609_v7 = vmax.f32 %v608_v6, 1e-15 }
  0xf5   : > { %v610_v10 = vmul.f32 0.70710677, %v609_v7 }
  0xf7   : > { %v1211_v8 = vpop.eup %1210  ;;  %vm613_vm1 = vcmp.eq.f32.partialorder %v610_v10, inf  ;;  %v616_v19 = vand.u32 2147483648, %v610_v10  ;;  %vm615_vm2 = vcmp.eq.f32.partialorder %v610_v10, 0.0 }
  0xf8   : > { %v1035_v9 = vmul.f32 0.7, %v1211_v8 }
  0xfa   : > { %1212 = vpow2.f32 %v1035_v9 }
  0xfb   : > { %1214 = vrsqrt.f32 %v610_v10 }
 0x104   : > { %v1213_v11 = vpop.eup %1212 }
 0x105   : > { %v1215_v12 = vpop.eup %1214  ;;  %v1043_v13 = vsel %vm1037_vm12, 2143289344, %v1213_v11 }
 0x106   : > { %v1044_v14 = vsel %vm1038_vm13, 0, %v1043_v13  ;;  %v612_v15 = vmul.f32 %v1215_v12, %v610_v10 }
 0x107   : > { %v1049_v16 = vsel %vm1042_vm14, 2139095040, %v1044_v14 }
 0x108   : > { %v1053_v17 = vsel %vm1050_vm15, 2143289344, %v1049_v16  ;;  %v614_v21 = vsel %vm613_vm1, %v610_v10, %v612_v15 }
 0x109   : > { %v1054_v18 = vsel %vm1039_vm0, 1065353216, %v1053_v17  ;;  %v617_v24 = vsel %vm615_vm2, %v616_v19, %v614_v21 }
 0x10a   : > { %v1002_v20 = vadd.f32 -16.510439, %v1054_v18  ;;  %v547_v22 = vmul.f32 0.05753935, %v1054_v18  ;;  %vm546_vm3 = vcmp.lt.f32.partialorder %v1054_v18, 16.510439 }
 0x10b   : > { %v1901_v27 = vsub.f32 1.0, %v617_v24 }
 0x10c   : > { %v549_v23 = vmul.f32 0.0020189246, %v1002_v20 }
 0x10d   : > { %v1059_v29 = vand.u32 2147483647, %v1901_v27  ;;  %v1064_v31 = vtrunc.f32 %v1901_v27  ;;  %vm1063_vm7 = vcmp.lt.f32.partialorder %v1901_v27, 0 }
 0x10e   : > { %v550_v25 = vadd.f32 0.95, %v549_v23  ;;  %v1095_v41 = vsel %vm1063_vm7, 0, %v1504_v40  ;;  %v1083_v46 = vsel %vm1063_vm7, 2139095040, %v1505_v45 }
 0x10f   : > { %v1068_v30 = vtrunc.f32 %v1059_v29  ;;  %vm1060_vm4 = vcmp.eq.f32.partialorder %v1059_v29, 2139095040  ;;  %vm1065_vm5 = vcmp.ne.f32.partialorder %v1901_v27, %v1064_v31  ;;  %vm1067_vm15 = vcmp.lt.f32.partialorder %v1059_v29, 1266679808 }
 0x110   : > { %v1899_v26 = vsel %vm546_vm3, %v547_v22, %v550_v25  ;;  %vm1909_vm6 = vmor %vm1065_vm5, %vm1060_vm4  ;;  %v1096_v44 = vxor.u32 2147483648, %v1095_v41 }
 0x111   : > { %v1055_v28 = vand.u32 2147483647, %v1899_v26  ;;  %v1069_v32 = vcvt.f32.s32 %v1068_v30  ;;  %vm1076_vm8 = vcmp.eq.f32.partialorder %v1899_v26, 0  ;;  %vm1072_vm11 = vmneg %vm1909_vm6  ;;  %vm1075_vm12 = vcmp.lt.f32.partialorder %v1899_v26, 0 }
 0x112   : > { %vm1922_vm13 = vmand %vm1063_vm7, %vm1076_vm8  ;;  %vm1078_vm5 = vcmp.lt.s32.totalorder %v1899_v26, 0 }
 0x113   : > { %1216 = vlog2.f32 %v1055_v28  ;;  %v1070_v35 = vand.u32 1, %v1069_v32  ;;  %vm1079_vm9 = vcmp.gt.f32.partialorder %v1055_v28, 1065353216  ;;  %vm1938_vm1 = vmand %vm1075_vm12, %vm1909_vm6  ;;  %vm1092_vm6 = vcmp.eq.f32.partialorder %v1899_v26, 3212836864 }
 0x114   : > { %vm1928_vm14 = vmxor %vm1063_vm7, %vm1079_vm9  ;;  %vm1101_vm7 = vcmp.ne.f32.partialorder %v1901_v27, %v1901_v27 }
 0x115   : > { %vm1071_vm10 = vcmp.eq.s32.totalorder %v1070_v35, 1  ;;  %vm1090_vm2 = vmor %vm1922_vm13, %vm1928_vm14  ;;  %vm1077_vm13 = vcmp.eq.f32.partialorder %v1899_v26, 1065353216  ;;  %vm1080_vm14 = vcmp.eq.f32.partialorder %v1055_v28, 2139095040 }
 0x116   : > { %vm1073_vm0 = vmand %vm1071_vm10, %vm1072_vm11  ;;  %v1091_v50 = vsel %vm1090_vm2, 2139095040, %v1505_v45  ;;  %vm1100_vm10 = vcmp.ne.f32.partialorder %v1899_v26, %v1899_v26  ;;  %vm1061_vm11 = vcmp.eq.f32.partialorder %v1901_v27, 0 }
 0x117   : > { %vm1074_vm3 = vmand %vm1067_vm15, %vm1073_vm0  ;;  %v1093_v55 = vsel %vm1092_vm6, 1065353216, %v1091_v50  ;;  %vm1062_vm0 = vcmp.eq.f32.partialorder %v1901_v27, 1065353216 }
 0x118   : > { %v1097_v52 = vsel %vm1074_vm3, %v1096_v44, %v1095_v41  ;;  %vm1085_vm9 = vmand %vm1078_vm5, %vm1074_vm3 }
 0x119   : > { %v1098_v57 = vsel %vm1075_vm12, %v1097_v52, %v1095_v41  ;;  %vm1104_vm15 = vmor %vm1077_vm13, %vm1061_vm11 }
 0x11d   : > { %v1217_v33 = vpop.eup %1216 }
 0x11e   : > { %v1057_v34 = vmul.f32 %v1217_v33, %v1901_v27 }
 0x120   : > { %1218 = vpow2.f32 %v1057_v34 }
 0x12a   : > { %v1219_v47 = vpop.eup %1218 }
 0x12b   : > { %v1082_v51 = vsel %vm1938_vm1, 2143289344, %v1219_v47  ;;  %vm623_vm1 = vcmp.lt.s32.totalorder %v509_v56, 256 }
 0x12c   : > { %v1084_v53 = vsel %vm1076_vm8, %v1083_v46, %v1082_v51  ;;  %vm1102_vm8 = vmor %vm1100_vm10, %vm1101_vm7 }
 0x12d   : > { %v1086_v54 = vxor.u32 2147483648, %v1084_v53 }
 0x12f   : > { %v1087_v58 = vsel %vm1085_vm9, %v1086_v54, %v1084_v53 }
 0x130   : > { %v1094_v59 = vsel %vm1060_vm4, %v1093_v55, %v1087_v58 }
 0x131   : > { %v1099_v60 = vsel %vm1080_vm14, %v1098_v57, %v1094_v59 }
 0x132   : > { %v1103_v61 = vsel %vm1102_vm8, 2143289344, %v1099_v60 }
 0x133   : > { %v1105_v62 = vsel %vm1104_vm15, 1065353216, %v1103_v61 }
 0x134   : > { %v1106_v63 = vsel %vm1062_vm0, %v1899_v26, %v1105_v62 }
 0x135   : > { %v624_v0 = vsel %vm623_vm1, %v1106_v63, 0.0 }
 0x136   : > { %626 = vst [vmem:[%s495_s26] sm:$0xff] %v624_v0 }
 0x137   : > { %1413 = shalt.err (!%p1410_p11)
}
 0x138   : > { %s1414_s18 = scalar_lea.hbm %s1972_s14, 128  ;;  %s1418_s17 = scalar_lea.hbm %s2077_s3, 256 }
 0x139   : > { %p1415_p6 = scmp.ne.s32.totalorder %s1972_s14, %s1414_s18  ;;  %p1419_p3 = scmp.lt.u32.totalorder %s1972_s14, %s2077_s3 }
 0x13a   : > { %p1420_p4 = scmp.lt.u32.totalorder %s1418_s17, %s1414_s18  ;;  %p1422_p0 = scmp.lt.u32.totalorder %s1414_s18, %s1972_s14 }
 0x13b   : > { %p1416_p2 = pnand %p1415_p6, %p2078_p10 }
 0x13c   : > { %p1421_p5 = por %p1420_p4, %p1419_p3 }
 0x13d   : > { %p1417_p7 = pneg %p1416_p2 }
 0x13e   : > { %p1423_p9 = por %p1422_p0, %p1421_p5 }
 0x140   : > { %p1424_p12 = pnand %p1423_p9, %p1417_p7 }
 0x142   : > { %1427 = shalt.err (!%p1424_p12)
}
 0x143   : > { %1119 = dma.vmem_to_hbm [thread:$0]  (%p2078_p10), %s1967_s30, 128, %s1972_s14, %s744_s6  }
 0x144 PF: > { %s2079_s20 = sld [smem:[#allocation19_spill]]  ;;  %s2080_s23 = sld [smem:[#allocation24_spill]] }
 0x145   : > { %s2081_s27 = sld [smem:[#allocation21_spill]] }
 0x14a   : > { %s770_s1 = sand.u32 1, %s2079_s20   ;;  %p2082_p8 = scmp.ne.s32.totalorder %s2080_s23, 0 }
 0x14b   : > { %p2083_p1 = scmp.ge.s32.totalorder %s2081_s27, 2  ;;  %s771_s15 = scalar_lea.sflag [#allocation4], %s770_s1 }
 0x14d   : > { %p1141_p13 = pnand %p2083_p1, %p2082_p8 }
 0x14f   : > { %1469 = dma.done.wait (!%p1141_p13), %s771_s15, 128  }
 0x150   : > { %1471 = vsyncadd (!%p1141_p13), %s771_s15, 4294967168  ;;  %s31_s26 = sadd.s32 1, %s2081_s27   ;;  %s2084_s9 = sld [smem:[#allocation20_spill]] }
 0x151   : > { %p28_p11 = scmp.ge.s32.totalorder %s31_s26, 4   ;;  %s2085_s23 = sld [smem:[#allocation23_spill]] }
 0x152   : > { %s2086_s10 = sld [smem:[#allocation22_spill]]  ;;  %s2087_s21 = smov %s1478_s22 }
 0x153   : > { %s2089_s24 = smov %s1490_s25  ;;  %30 = sbr.rel (!%p28_p11) target bundleno = 16 (0x10), region = 174 }
 0x156   : > { %s2088_s22 = smov %s2084_s9 }
 0x158   : > { %s2090_s25 = smov %s2086_s10 }
 0x15a   :  { %776 = vsyncpa [#allocation3], 1 }
 0x15b   :  { %778 = vsyncpa [#allocation3 + $0x1], 1 }
 0x15c   :  { %779 = vsyncpa [#allocation6], 1 }
 0x15d   :  { %781 = vsyncpa [#allocation6 + $0x1], 1 }
 0x15e   :  { %782 = vsyncpa [#allocation9], 1 }
 0x15f   :  { %784 = vsyncpa [#allocation9 + $0x1], 1 }
 0x160   :  { %785 = vsyncpa [#allocation12], 1 }
 0x161   :  { %787 = vsyncpa [#allocation12 + $0x1], 1 }
 0x162   :  { %788 = vsyncpa [#allocation4], 1 }
 0x163   :  { %790 = vsyncpa [#allocation4 + $0x1], 1 }

</bundles_post_ra>
